<compile_context>
chip_gen: v6e
topology: v6e:2x2x1
jax: 0.10.0
libtpu: 0.0.40
codegen_flags: <defaults>
</compile_context>

<pallas_src>
import jax
import jax.numpy as jnp
from jax.experimental import pallas as pl
from jax.experimental.pallas import tpu as pltpu


def _sin_fun_kernel(x_ref, o_ref):
    x = x_ref[...].astype(jnp.float32)
    s = jnp.abs(jnp.sin(x))
    # Exact parity with torch's relu(x)/x * |sin(x)|:
    #   x > 0 (incl. +inf): |sin(x)|
    #   x == 0 (+/-0):      NaN
    #   x < 0 finite:       -0.0
    #   x == -inf or NaN:   NaN (propagated through s * -0.0)
    neg_branch = s * jnp.float32(-0.0)
    out = jnp.where(x > 0, s,
                    jnp.where(x == 0, jnp.float32(jnp.nan), neg_branch))
    o_ref[...] = out.astype(o_ref.dtype)


def _round_up(a, b):
    return ((a + b - 1) // b) * b


def _tpu_generation():
    """Best-effort TPU generation detection (7 for v7x, 6 for v6e, ...)."""
    try:
        kind = jax.devices()[0].device_kind.lower()
    except Exception:
        return None
    for gen in (7, 6, 5, 4):
        if str(gen) in kind:
            return gen
    return None


def sin_fun(x):
    """Elementwise relu(x)/x * |sin(x)| via a Pallas TPU kernel."""
    orig_shape = x.shape
    orig_dtype = x.dtype
    lanes = 128

    total = x.size
    assert total % lanes == 0, "example sized to be a multiple of 128 lanes"
    rows = total // lanes

    # Free view of the contiguous NCHW buffer as lane-dense (rows, 128).
    x2 = x.reshape(rows, lanes)

    itemsize = jnp.dtype(orig_dtype).itemsize
    # Packed sublane multiple: 8 for f32, 16 for bf16, 32 for int8/fp8.
    sub = max(8, 32 // itemsize)

    gen = _tpu_generation()
    two_tensorcores = (gen is not None and gen >= 7)

    # Generation-aware block-byte cap (see header comment).
    if gen is not None and gen <= 5:
        block_bytes_cap = 2 * (1 << 20)   # v5e: 2 MiB blocks
    else:
        block_bytes_cap = 4 * (1 << 20)   # v6e / v7x / unknown: 4 MiB blocks

    max_tile_rows = max(sub, (block_bytes_cap // (lanes * itemsize)) // sub * sub)

    if two_tensorcores:
        # Keep >= 2 grid steps so the parallel axis can shard across both TCs.
        want_rows = max(sub, _round_up(pl.cdiv(rows, 2), sub))
        tile_rows = min(max_tile_rows, want_rows)
    else:
        # Single TC: one full-extent block for small inputs (no serial-loop
        # overhead); otherwise the largest sublane-aligned block under the cap.
        tile_rows = rows if rows <= max_tile_rows else max_tile_rows

    grid = (pl.cdiv(rows, tile_rows),)

    block_bytes = tile_rows * lanes * itemsize
    # in + out, double-buffered, plus headroom; never below the usual default,
    # never above the 32 MiB scoped ceiling.
    vmem_limit = int(min(32 * (1 << 20),
                         max(16 * (1 << 20), 4 * block_bytes + 2 * (1 << 20))))

    n = total
    cost = pl.CostEstimate(
        flops=30 * n,              # sin range-reduction/poly + masks (rough)
        transcendentals=n,
        bytes_accessed=2 * n * itemsize,
    )

    out2 = pl.pallas_call(
        _sin_fun_kernel,
        out_shape=jax.ShapeDtypeStruct((rows, lanes), orig_dtype),
        grid_spec=pltpu.PrefetchScalarGridSpec(
            num_scalar_prefetch=0,
            grid=grid,
            in_specs=[pl.BlockSpec((tile_rows, lanes), lambda i: (i, 0))],
            out_specs=pl.BlockSpec((tile_rows, lanes), lambda i: (i, 0)),
        ),
        compiler_params=pltpu.CompilerParams(
            dimension_semantics=("parallel",),
            vmem_limit_bytes=vmem_limit,
        ),
        cost_estimate=cost,
    )(x2)

    return out2.reshape(orig_shape)


if __name__ == "__main__":
    key = jax.random.PRNGKey(0)
    # NCHW input, consistent with typical PyTorch convention: (2, 4, 16, 16)
    x = jax.random.normal(key, (2, 4, 16, 16), dtype=jnp.float32)

    out = sin_fun(x)
    out = jax.block_until_ready(out)

    # Sanity check against a pure-JAX reference using the original arithmetic.
    ref = (jnp.maximum(x, 0.0) / x) * jnp.abs(jnp.sin(x))
    assert out.shape == x.shape and out.dtype == x.dtype
    assert jnp.allclose(out, ref, atol=1e-6, equal_nan=True)

    print("KERNEL_OK")
</pallas_src>

<mosaic_0001>
module attributes {stable_mosaic.version = 11 : i64} {
  func.func @_sin_fun_kernel(%arg0: i32, %arg1: memref<16x128xf32, #tpu.memory_space<vmem>>, %arg2: memref<16x128xf32, #tpu.memory_space<vmem>>) attributes {dimension_semantics = [#tpu.dimension_semantics<parallel>], iteration_bounds = array<i64: 1>, scalar_prefetch = 0 : i64, scratch_operands = 0 : i64, tpu.core_type = #tpu.core_type<tc>, window_params = [{transform_indices = @transform_0, window_bounds = array<i64: 16, 128>}, {transform_indices = @transform_1, window_bounds = array<i64: 16, 128>}]} {
    %c0 = arith.constant 0 : index
    %c0_0 = arith.constant 0 : index
    %0 = vector.load %arg1[%c0, %c0_0] : memref<16x128xf32, #tpu.memory_space<vmem>>, vector<16x128xf32>
    %1 = math.sin %0 : vector<16x128xf32>
    %2 = math.absf %1 : vector<16x128xf32>
    %cst = arith.constant -0.000000e+00 : f32
    %3 = vector.broadcast %cst : f32 to vector<16x128xf32>
    %4 = arith.mulf %2, %3 : vector<16x128xf32>
    %cst_1 = arith.constant 0.000000e+00 : f32
    %5 = vector.broadcast %cst_1 : f32 to vector<16x128xf32>
    %6 = arith.cmpf ogt, %0, %5 : vector<16x128xf32>
    %cst_2 = arith.constant 0.000000e+00 : f32
    %7 = vector.broadcast %cst_2 : f32 to vector<16x128xf32>
    %8 = arith.cmpf oeq, %0, %7 : vector<16x128xf32>
    %cst_3 = arith.constant 0x7FC00000 : f32
    %9 = vector.broadcast %cst_3 : f32 to vector<16x128xf32>
    %10 = arith.select %8, %9, %4 : vector<16x128xi1>, vector<16x128xf32>
    %11 = arith.select %6, %2, %10 : vector<16x128xi1>, vector<16x128xf32>
    %c0_4 = arith.constant 0 : index
    %c0_5 = arith.constant 0 : index
    %12 = vector.load %arg2[%c0_4, %c0_5] : memref<16x128xf32, #tpu.memory_space<vmem>>, vector<16x128xf32>
    tpu.vector_store %arg2[%c0_4, %c0_5], %11 {strides = array<i32>} : memref<16x128xf32, #tpu.memory_space<vmem>>, vector<16x128xf32>,
    return
  }
  func.func @transform_0(%arg0: i32) -> (i32, i32) {
    %c0_i32 = arith.constant 0 : i32
    %c0_i32_0 = arith.constant 0 : i32
    return %arg0, %c0_i32 : i32, i32
  }
  func.func @transform_1(%arg0: i32) -> (i32, i32) {
    %c0_i32 = arith.constant 0 : i32
    %c0_i32_0 = arith.constant 0 : i32
    return %arg0, %c0_i32 : i32, i32
  }
}

</mosaic_0001>

<bundles_post_ra>
// kernel: tpu_custom_call.1
= control target key start
LH: loop header
LB: loop body
LE: loop exit
PB: predicated region body
PF: predicated region fallthrough
CT: control target
= control target key end

     0   :  { %6 = vsyncpa [#allocation3], 0  ;;  %s453_s0 = inlined_call_operand.hbm [shape: f32[16,128], index: 0, kind: input, shape index: {}]   ;;  %s454_s1 = inlined_call_operand.hbm [shape: f32[16,128], index: 1, kind: output, shape index: {}]  }
   0x1   :  { %7 = vsyncpa [#allocation4], 0  ;;  %s342_s6 = smov [#allocation2]  }
   0x2   :  { %s13_s7 = sshll.u32 %s342_s6, 4  ;;  %s14_s7 = int_to_ptr.vmem [resolvable:$true] %s13_s7 }
   0x3   :  { %s306_s8 = scalar_lea.vmem %s14_s7, 256  ;;  %p311_p1 = scmp.lt.s32.totalorder %s14_s7, %s14_s7 }
   0x4   :  { %p307_p0 = scmp.ne.s32.totalorder %s14_s7, %s306_s8  ;;  %p312_p2 = scmp.lt.s32.totalorder %s306_s8, %s306_s8 }
   0x6   :  { %p313_p3 = por %p312_p2, %p311_p1 }
   0x8   :  { %p314_p4 = pnand %p313_p3, %p307_p0 }
   0xa   :  { %317 = shalt.err (!%p314_p4)
}
   0xb   :  { %s343_s9 = smov 128   ;;  %s344_s10 = smov 8  }
   0xc   :  { %19 = dma.hbm_to_vmem [thread:$0]  %s453_s0, 256, %s14_s7, [#allocation3], %s343_s9, %s343_s9, %s344_s10  }
   0xd   :  { %338 = dma.done.wait [#allocation3], 256  }
   0xe   :  { %339 = vsyncadd [#allocation3], 4294967040  ;;  %v368_v0 = vld [vmem:[#allocation2] sm:$0xff]  ;;  %v370_v1 = vld [vmem:[#allocation2 + $0x8] sm:$0xff]  ;;  %v345_v21 = vmov 683565275  }
   0xf   :  { %v25_v2 = vand.u32 2147483647, %v368_v0  ;;  %v28_v3 = vand.u32 2139095040, %v368_v0  ;;  %v132_v5 = vand.u32 2139095040, %v370_v1  ;;  %v129_v7 = vand.u32 2147483647, %v370_v1 }
  0x10   :  { %v346_v23 = vmov 2475754826   ;;  %v347_v25 = vmov 2131351028   ;;  %v348_v27 = vmov 2102212464  }
  0x11   :  { %v29_v4 = vshrl.u32 %v28_v3, 23  ;;  %v32_v6 = vand.u32 8388607, %v25_v2  ;;  %v133_v9 = vshrl.u32 %v132_v5, 23  ;;  %v380_v13 = vand.u32 8388607, %v129_v7 }
  0x12   :  { %v349_v29 = vmov 920167782   ;;  %v350_v37 = vmov 1326507024   ;;  %vm27_vm14 = vcmp.lt.s32.totalorder %v368_v0, 0  ;;  %s351_s0 = smov [#allocation5]  }
  0x13   :  { %v264_v8 = vadd.s32 4294967169, %v29_v4  ;;  %v268_v11 = vadd.s32 4294967169, %v133_v9  ;;  %v33_v12 = vor.u32 8388608, %v32_v6  ;;  %v137_v19 = vor.u32 8388608, %v380_v13  ;;  %s252_s13 = sshll.u32 %s351_s0, 4  ;;  %s253_s13 = int_to_ptr.vmem [resolvable:$true] %s252_s13 }
  0x14   :  { %vm26_vm15 = vcmp.le.f32.partialorder %v25_v2, 0.7853982  ;;  %s318_s14 = scalar_lea.vmem %s253_s13, 256  ;;  %p323_p6 = scmp.lt.s32.totalorder %s253_s13, %s253_s13 }
  0x15   :  { %v35_v10 = vadd.s32 1, %v264_v8  ;;  %v139_v14 = vadd.s32 1, %v268_v11  ;;  %v382_v18 = vshll.u32 %v33_v12, 8  ;;  %p319_p5 = scmp.ne.s32.totalorder %s253_s13, %s318_s14  ;;  %p324_p7 = scmp.lt.s32.totalorder %s318_s14, %s318_s14 }
  0x17   :  { %vm36_vm0 = vcmp.gt.s32.totalorder %v35_v10, 0  ;;  %vm140_vm1 = vcmp.gt.s32.totalorder %v139_v14, 0  ;;  %p325_p8 = por %p324_p7, %p323_p6 }
  0x18   :  { %v37_v15 = vsel %vm36_vm0, %v35_v10, 0  ;;  %v141_v31 = vsel %vm140_vm1, %v139_v14, 0  ;;  %vm131_vm0 = vcmp.lt.s32.totalorder %v370_v1, 0  ;;  %vm432_vm1 = vcmp.le.f32.partialorder %v129_v7, 0.7853982 }
  0x19   :  { %v38_v16 = vshrl.u32 %v37_v15, 5  ;;  %v39_v17 = vand.u32 31, %v37_v15  ;;  %v142_v44 = vshrl.u32 %v141_v31, 5  ;;  %v143_v45 = vand.u32 31, %v141_v31  ;;  %p326_p9 = pnand %p325_p8, %p319_p5 }
  0x1b   :  { %v40_v20 = vsub.s32 32, %v39_v17  ;;  %v42_v22 = vshll.u32 %v345_v21, %v39_v17  ;;  %v45_v24 = vshll.u32 %v346_v23, %v39_v17  ;;  %v48_v26 = vshll.u32 %v347_v25, %v39_v17 }
  0x1c   :  { %v51_v28 = vshll.u32 %v348_v27, %v39_v17  ;;  %v54_v30 = vshll.u32 %v349_v29, %v39_v17  ;;  %vm57_vm2 = vcmp.lt.s32.totalorder %v38_v16, 1  ;;  %vm58_vm3 = vcmp.lt.s32.totalorder %v38_v16, 2 }
  0x1d   :  { %v41_v32 = vshrl.u32 %v345_v21, %v40_v20  ;;  %v43_v33 = vshrl.u32 %v346_v23, %v40_v20  ;;  %v46_v34 = vshrl.u32 %v347_v25, %v40_v20  ;;  %v49_v35 = vshrl.u32 %v348_v27, %v40_v20 }
  0x1e   :  { %v52_v36 = vshrl.u32 %v349_v29, %v40_v20  ;;  %v55_v38 = vshrl.u32 %v350_v37, %v40_v20  ;;  %vm59_vm4 = vcmp.lt.s32.totalorder %v38_v16, 3  ;;  %vm60_vm5 = vcmp.lt.s32.totalorder %v38_v16, 4 }
  0x1f   :  { %v44_v39 = vor.u32 %v43_v33, %v42_v22  ;;  %v47_v40 = vor.u32 %v46_v34, %v45_v24  ;;  %v50_v41 = vor.u32 %v49_v35, %v48_v26  ;;  %v144_v53 = vsub.s32 32, %v143_v45 }
  0x20   :  { %v53_v42 = vor.u32 %v52_v36, %v51_v28  ;;  %v56_v43 = vor.u32 %v55_v38, %v54_v30  ;;  %v146_v57 = vshll.u32 %v345_v21, %v143_v45  ;;  %v149_v6 = vshll.u32 %v346_v23, %v143_v45 }
  0x21   :  { %v61_v46 = vsel %vm57_vm2, %v41_v32, %v44_v39  ;;  %v62_v47 = vsel %vm60_vm5, %v50_v41, 2102212464  ;;  %v65_v48 = vsel %vm57_vm2, %v44_v39, %v47_v40  ;;  %v69_v49 = vsel %vm57_vm2, %v47_v40, %v50_v41 }
  0x22   :  { %v63_v50 = vsel %vm59_vm4, %v47_v40, %v62_v47  ;;  %v66_v51 = vsel %vm60_vm5, %v53_v42, 920167782  ;;  %v70_v52 = vsel %vm60_vm5, %v56_v43, 1326507024  ;;  %v145_v61 = vshrl.u32 %v345_v21, %v144_v53 }
  0x23   :  { %v64_v54 = vsel %vm58_vm3, %v61_v46, %v63_v50  ;;  %v67_v55 = vsel %vm59_vm4, %v50_v41, %v66_v51  ;;  %v71_v56 = vsel %vm59_vm4, %v53_v42, %v70_v52  ;;  %v147_v5 = vshrl.u32 %v346_v23, %v144_v53 }
  0x24   :  { %v68_v58 = vsel %vm58_vm3, %v65_v48, %v67_v55  ;;  %v72_v59 = vsel %vm58_vm3, %v69_v49, %v71_v56  ;;  %v80_v60 = vmul.u32 %v382_v18, %v64_v54  ;;  %v150_v8 = vshrl.u32 %v347_v25, %v144_v53 }
  0x25   :  { %v396_v62 = vmul.u32.u64.low %v382_v18, %v72_v59  ;;  %v397_v63 = vmul.u32.u64.high %v382_v18, %v72_v59, %v396_v62  ;;  %v400_v3 = vmul.u32.u64.low %v382_v18, %v68_v58  ;;  %v401_v4 = vmul.u32.u64.high %v382_v18, %v68_v58, %v400_v3 }
  0x26   :  { %v152_v9 = vshll.u32 %v347_v25, %v143_v45  ;;  %v153_v10 = vshrl.u32 %v348_v27, %v144_v53  ;;  %v155_v11 = vshll.u32 %v348_v27, %v143_v45  ;;  %v156_v12 = vshrl.u32 %v349_v29, %v144_v53 }
  0x27   :  { %v158_v14 = vshll.u32 %v349_v29, %v143_v45  ;;  %v148_v15 = vor.u32 %v147_v5, %v146_v57  ;;  %v151_v16 = vor.u32 %v150_v8, %v149_v6  ;;  %v159_v17 = vshrl.u32 %v350_v37, %v144_v53 }
  0x28   :  { %vm161_vm6 = vcmp.lt.s32.totalorder %v142_v44, 1  ;;  %vm82_vm7 = vc.u32 %v397_v63, %v400_v3  ;;  %v83_v20 = vadd.s32 1, %v401_v4  ;;  %v154_v21 = vor.u32 %v153_v10, %v152_v9 }
  0x29   :  { %v177_v18 = vshll.u32 %v137_v19, 8  ;;  %v157_v22 = vor.u32 %v156_v12, %v155_v11  ;;  %v160_v23 = vor.u32 %v159_v17, %v158_v14  ;;  %vm162_vm8 = vcmp.lt.s32.totalorder %v142_v44, 2 }
  0x2a   :  { %vm163_vm9 = vcmp.lt.s32.totalorder %v142_v44, 3  ;;  %v84_v24 = vsel %vm82_vm7, %v83_v20, %v401_v4  ;;  %vm164_vm10 = vcmp.lt.s32.totalorder %v142_v44, 4  ;;  %v165_v25 = vsel %vm161_vm6, %v145_v61, %v148_v15 }
  0x2b   :  { %v169_v26 = vsel %vm161_vm6, %v148_v15, %v151_v16  ;;  %v85_v27 = vadd.s32 %v84_v24, %v80_v60  ;;  %v166_v28 = vsel %vm164_vm10, %v154_v21, 2102212464  ;;  %v170_v29 = vsel %vm164_vm10, %v157_v22, 920167782 }
  0x2c   :  { %v173_v30 = vsel %vm161_vm6, %v151_v16, %v154_v21  ;;  %v167_v31 = vsel %vm163_vm9, %v151_v16, %v166_v28  ;;  %v171_v32 = vsel %vm163_vm9, %v154_v21, %v170_v29  ;;  %v174_v13 = vsel %vm164_vm10, %v160_v23, 1326507024 }
  0x2d   :  { %v86_v19 = vadd.s32 536870912, %v85_v27  ;;  %v172_v33 = vsel %vm162_vm8, %v169_v26, %v171_v32  ;;  %v175_v34 = vsel %vm163_vm9, %v157_v22, %v174_v13  ;;  %v168_v35 = vsel %vm162_vm8, %v165_v25, %v167_v31 }
  0x2e   :  { %v176_v36 = vsel %vm162_vm8, %v173_v30, %v175_v34  ;;  %v414_v37 = vmul.u32.u64.low %v177_v18, %v172_v33  ;;  %v415_v38 = vmul.u32.u64.high %v177_v18, %v172_v33, %v414_v37  ;;  %v184_v43 = vmul.u32 %v177_v18, %v168_v35 }
  0x2f   :  { %v87_v39 = vshrl.u32 %v86_v19, 30  ;;  %v417_v40 = vmul.u32.u64.low %v177_v18, %v176_v36  ;;  %v418_v41 = vmul.u32.u64.high %v177_v18, %v176_v36, %v417_v40  ;;  %v81_v55 = vadd.s32 %v400_v3, %v397_v63 }
  0x30   :  { %v187_v45 = vadd.s32 1, %v415_v38  ;;  %vm117_vm5 = vweird.f32 %v368_v0  ;;  %vm239_vm6 = vcmp.eq.f32.partialorder %v368_v0, 0.0  ;;  %vm237_vm7 = vcmp.gt.f32.partialorder %v368_v0, 0.0 }
  0x31   :  { %v88_v42 = vshll.u32 %v87_v39, 30  ;;  %vm186_vm11 = vc.u32 %v418_v41, %v414_v37  ;;  %v185_v15 = vadd.s32 %v414_v37, %v418_v41  ;;  %v111_v16 = vsub.s32 4, %v87_v39 }
  0x32   :  { %v188_v47 = vsel %vm186_vm11, %v187_v45, %v415_v38  ;;  %vm221_vm11 = vweird.f32 %v370_v1 }
  0x33   :  { %v89_v46 = vsub.s32 %v85_v27, %v88_v42  ;;  %v189_v49 = vadd.s32 %v188_v47, %v184_v43  ;;  %v112_v25 = vsel %vm27_vm14, %v111_v16, %v87_v39 }
  0x34   :  { %v114_v31 = vsel %vm26_vm15, 0, %v112_v25 }
  0x35   :  { %v91_v48 = vsub.s32 0, %v89_v46  ;;  %v190_v50 = vadd.s32 536870912, %v189_v49  ;;  %v118_v13 = vadd.s32 3, %v114_v31 }
  0x37   :  { %v265_v44 = vmin.u32 %v91_v48, %v89_v46  ;;  %v191_v52 = vshrl.u32 %v190_v50, 30  ;;  %v119_v35 = vand.u32 3, %v118_v13 }
  0x39   :  { %v93_v51 = vclz %v265_v44  ;;  %v192_v54 = vshll.u32 %v191_v52, 30  ;;  %v215_v2 = vsub.s32 4, %v191_v52  ;;  %vm124_vm2 = vcmp.eq.s32.totalorder %v119_v35, 2 }
  0x3a   :  { %vm121_vm3 = vcmp.eq.s32.totalorder %v119_v35, 0  ;;  %vm120_vm4 = vcmp.lt.s32.totalorder %v119_v35, 2 }
  0x3b   :  { %v266_v53 = vadd.s32 4294967294, %v93_v51  ;;  %v193_v57 = vsub.s32 %v189_v49, %v192_v54  ;;  %v216_v37 = vsel %vm131_vm0, %v215_v2, %v191_v52 }
  0x3c   :  { %v218_v40 = vsel %vm432_vm1, 0, %v216_v37 }
  0x3d   :  { %vm267_vm12 = vcmp.lt.s32.totalorder %v266_v53, 0  ;;  %v195_v61 = vsub.s32 0, %v193_v57  ;;  %v222_v45 = vadd.s32 3, %v218_v40 }
  0x3e   :  { %v96_v56 = vsel %vm267_vm12, 0, %v266_v53  ;;  %vm240_vm12 = vcmp.eq.f32.partialorder %v370_v1, 0.0 }
  0x3f   :  { %v97_v58 = vsub.s32 32, %v96_v56  ;;  %v98_v59 = vshll.u32 %v89_v46, %v96_v56  ;;  %v101_v60 = vsub.s32 4294967266, %v96_v56  ;;  %v269_v5 = vmin.u32 %v195_v61, %v193_v57 }
  0x40   :  { %v223_v44 = vand.u32 3, %v222_v45 }
  0x41   :  { %v99_v62 = vshrl.u32 %v81_v55, %v97_v58  ;;  %v102_v4 = vadd.s32 127, %v101_v60  ;;  %v197_v9 = vclz %v269_v5 }
  0x42   :  { %vm228_vm8 = vcmp.eq.s32.totalorder %v223_v44, 2  ;;  %vm225_vm9 = vcmp.eq.s32.totalorder %v223_v44, 0  ;;  %vm224_vm10 = vcmp.lt.s32.totalorder %v223_v44, 2 }
  0x43   :  { %v100_v6 = vor.u32 %v99_v62, %v98_v59  ;;  %v103_v8 = vshll.u32 %v102_v4, 23  ;;  %v270_v12 = vadd.s32 4294967294, %v197_v9 }
  0x45   :  { %v104_v10 = vor.u32 4788187, %v103_v8  ;;  %v107_v11 = vcvt.s32.f32 %v100_v6  ;;  %vm271_vm13 = vcmp.lt.s32.totalorder %v270_v12, 0 }
  0x46   :  { %v200_v3 = vsel %vm271_vm13, 0, %v270_v12  ;;  %vm238_vm13 = vcmp.gt.f32.partialorder %v370_v1, 0.0 }
  0x47   :  { %v105_v14 = vand.u32 2147483647, %v104_v10  ;;  %v201_v17 = vsub.s32 32, %v200_v3  ;;  %v202_v20 = vshll.u32 %v193_v57, %v200_v3  ;;  %v205_v21 = vsub.s32 4294967266, %v200_v3 }
  0x49   :  { %v108_v63 = vmul.f32 %v107_v11, %v105_v14  ;;  %v203_v22 = vshrl.u32 %v185_v15, %v201_v17  ;;  %v206_v23 = vadd.s32 127, %v205_v21 }
  0x4b   :  { %v109_v18 = vxor.u32 2147483648, %v108_v63  ;;  %v204_v27 = vor.u32 %v203_v22, %v202_v20  ;;  %v207_v28 = vshll.u32 %v206_v23, 23 }
  0x4d   :  { %v110_v24 = vsel %vm27_vm14, %v109_v18, %v108_v63  ;;  %v208_v29 = vor.u32 4788187, %v207_v28  ;;  %v211_v30 = vcvt.s32.f32 %v204_v27 }
  0x4e   :  { %v113_v26 = vsel %vm26_vm15, %v368_v0, %v110_v24 }
  0x4f   :  { %290 = vcosq.f32 %v113_v26  ;;  %v209_v32 = vand.u32 2147483647, %v208_v29 }
  0x50   :  { %292 = vsinq.f32 %v113_v26 }
  0x51   :  { %v212_v19 = vmul.f32 %v211_v30, %v209_v32 }
  0x53   :  { %v213_v34 = vxor.u32 2147483648, %v212_v19 }
  0x55   :  { %v214_v36 = vsel %vm131_vm0, %v213_v34, %v212_v19 }
  0x56   :  { %v217_v38 = vsel %vm432_vm1, %v370_v1, %v214_v36 }
  0x57   :  { %294 = vcosq.f32 %v217_v38 }
  0x58   :  { %296 = vsinq.f32 %v217_v38 }
  0x5c   :  { %v291_v39 = vpop.eup %290 }
  0x5d   :  { %v293_v41 = vpop.eup %292  ;;  %v125_v7 = vxor.u32 2147483648, %v291_v39 }
  0x5e   :  { %v122_v42 = vxor.u32 2147483648, %v293_v41 }
  0x5f   :  { %v126_v43 = vsel %vm124_vm2, %v125_v7, %v293_v41 }
  0x60   :  { %v123_v46 = vsel %vm121_vm3, %v291_v39, %v122_v42 }
  0x61   :  { %v127_v47 = vsel %vm120_vm4, %v123_v46, %v126_v43 }
  0x62   :  { %v128_v48 = vsel %vm117_vm5, nan, %v127_v47 }
  0x63   :  { %v233_v49 = vand.u32 2147483647, %v128_v48 }
  0x64   :  { %v295_v51 = vpop.eup %294 }
  0x65   :  { %v235_v50 = vmul.f32 -0.0, %v233_v49  ;;  %v297_v53 = vpop.eup %296  ;;  %v229_v55 = vxor.u32 2147483648, %v295_v51 }
  0x66   :  { %v226_v56 = vxor.u32 2147483648, %v297_v53 }
  0x67   :  { %v241_v52 = vsel %vm239_vm6, nan, %v235_v50  ;;  %v230_v57 = vsel %vm228_vm8, %v229_v55, %v297_v53 }
  0x68   :  { %v243_v54 = vsel %vm237_vm7, %v233_v49, %v241_v52  ;;  %v227_v58 = vsel %vm225_vm9, %v295_v51, %v226_v56 }
  0x69   :  { %245 = vst [vmem:[#allocation5] sm:$0xff] %v243_v54  ;;  %v231_v59 = vsel %vm224_vm10, %v227_v58, %v230_v57 }
  0x6a   :  { %v232_v60 = vsel %vm221_vm11, nan, %v231_v59 }
  0x6b   :  { %v234_v61 = vand.u32 2147483647, %v232_v60 }
  0x6d   :  { %v236_v0 = vmul.f32 -0.0, %v234_v61 }
  0x6f   :  { %v242_v62 = vsel %vm240_vm12, nan, %v236_v0 }
  0x70   :  { %v244_v4 = vsel %vm238_vm13, %v234_v61, %v242_v62 }
  0x71   :  { %246 = vst [vmem:[#allocation5 + $0x8] sm:$0xff] %v244_v4 }
  0x72   :  { %329 = shalt.err (!%p326_p9)
}
  0x73   :  { %258 = dma.vmem_to_hbm [thread:$0]  %s253_s13, 256, %s454_s1, [#allocation4], %s343_s9, %s343_s9, %s344_s10  }
  0x74   :  { %340 = dma.done.wait [#allocation4], 256  }
  0x75   :  { %341 = vsyncadd [#allocation4], 4294967040 }
  0x76   :  { %262 = vsyncpa [#allocation3], 1 }
  0x77   :  { %263 = vsyncpa [#allocation4], 1 }

</bundles_post_ra>
